<compile_context>
chip_gen: v5e
topology: v5e:2x2
jax: 0.10.0
libtpu: 0.0.40
codegen_flags: <defaults>
</compile_context>

<pallas_src>
import math
import functools

import jax
import jax.numpy as jnp
from jax.experimental import pallas as pl
from jax.experimental.pallas import tpu as pltpu


# ---------------------------------------------------------------------------
# Buffers / parameters (mirrors Transformer.__init__ / init_weights)
# ---------------------------------------------------------------------------
def make_positional_encoding(d_model: int, max_len: int = 5000,
                             dtype=jnp.float32) -> jax.Array:
    position = jnp.arange(max_len, dtype=jnp.float32)[:, None]           # (L,1)
    div_term = jnp.exp(jnp.arange(0, d_model, 2, dtype=jnp.float32)
                       * (-math.log(10000.0) / d_model))                  # (D/2,)
    pe = jnp.zeros((max_len, 1, d_model), dtype=jnp.float32)
    pe = pe.at[:, 0, 0::2].set(jnp.sin(position * div_term))
    pe = pe.at[:, 0, 1::2].set(jnp.cos(position * div_term))
    return pe.astype(dtype)                                               # (L,1,D)


def init_params(key, *, vocab_size, pos_tag_size, max_len, d_model, nhead,
                num_layers, dim_ff, dtype=jnp.float32):
    assert d_model % nhead == 0
    D, F = d_model, dim_ff
    k_emb, k_head, k_layers = jax.random.split(key, 3)
    layer_keys = jax.random.split(k_layers, num_layers)

    def dense(k, fan_in, shape):
        return jax.random.normal(k, shape, dtype) / math.sqrt(fan_in)

    layers = []
    for lk in layer_keys:
        ks = jax.random.split(lk, 10)
        layers.append(dict(
            wq=dense(ks[0], D, (D, D)),
            bq=0.02 * jax.random.normal(ks[1], (1, D), dtype),
            wk=dense(ks[2], D, (D, D)), bk=jnp.zeros((1, D), dtype),
            wv=dense(ks[3], D, (D, D)), bv=jnp.zeros((1, D), dtype),
            wo=dense(ks[4], D, (D, D)),
            bo=0.02 * jax.random.normal(ks[5], (1, D), dtype),
            ln1_g=jnp.ones((1, D), dtype), ln1_b=jnp.zeros((1, D), dtype),
            w1=dense(ks[6], D, (D, F)),
            b1=0.02 * jax.random.normal(ks[7], (1, F), dtype),
            w2=dense(ks[8], F, (F, D)),
            b2=0.02 * jax.random.normal(ks[9], (1, D), dtype),
            ln2_g=jnp.ones((1, D), dtype), ln2_b=jnp.zeros((1, D), dtype),
        ))
    return dict(
        embedding=jax.random.uniform(k_emb, (vocab_size, D), dtype, -0.1, 0.1),
        pe=make_positional_encoding(D, max_len, dtype),
        layers=layers,
        norm_g=jnp.ones((1, D), dtype), norm_b=jnp.zeros((1, D), dtype),
        w_head=jax.random.uniform(k_head, (D, pos_tag_size), dtype, -0.1, 0.1),
        b_head=jnp.zeros((1, pos_tag_size), dtype),     # init_weights: bias zero
    )


# ---------------------------------------------------------------------------
# Shared math helper (pure jnp — works inside Pallas kernels and in the ref)
# ---------------------------------------------------------------------------
def _ln(y, g, b, eps):
    mu = jnp.mean(y, axis=-1, keepdims=True)
    var = jnp.mean(jnp.square(y - mu), axis=-1, keepdims=True)
    return (y - mu) * jax.lax.rsqrt(var + eps) * g + b


# ---------------------------------------------------------------------------
# Kernel 1: embedding gather + positional-encoding add
# ---------------------------------------------------------------------------
def _embed_pe_kernel(ids_ref, emb_ref, pe_ref, o_ref, *, seq_len):
    b = pl.program_id(0)
    # pe is indexed by the *batch* position (batch_first quirk of the module).
    pe_row = pe_ref[pl.ds(b, 1), :]                      # (1, D)
    # Static unroll over the (small, static) sequence length: each step is a
    # dynamic row read of the VMEM-resident embedding table plus one add.
    for s in range(seq_len):
        tok = ids_ref[b, s]                              # SMEM scalar read
        row = emb_ref[pl.ds(tok, 1), :]                  # (1, D) dynamic row
        o_ref[0, pl.ds(s, 1), :] = row + pe_row


def embed_pos_forward(tokens, emb, pe_rows):
    B, S = tokens.shape
    V, D = emb.shape
    kernel = functools.partial(_embed_pe_kernel, seq_len=S)
    grid_spec = pltpu.PrefetchScalarGridSpec(
        num_scalar_prefetch=1,                           # token ids -> SMEM
        grid=(B,),
        in_specs=[pl.BlockSpec((V, D), lambda b, ids: (0, 0)),   # full table
                  pl.BlockSpec((B, D), lambda b, ids: (0, 0))],  # pe rows
        out_specs=pl.BlockSpec((1, S, D), lambda b, ids: (b, 0, 0)),
    )
    return pl.pallas_call(
        kernel,
        grid_spec=grid_spec,
        out_shape=jax.ShapeDtypeStruct((B, S, D), emb.dtype),
        compiler_params=pltpu.CompilerParams(dimension_semantics=("parallel",)),
    )(tokens.astype(jnp.int32), emb, pe_rows)


# ---------------------------------------------------------------------------
# Kernel 2: one post-norm TransformerEncoderLayer (eval mode)
# ---------------------------------------------------------------------------
def _encoder_layer_kernel(x_ref, wq_ref, bq_ref, wk_ref, bk_ref, wv_ref, bv_ref,
                          wo_ref, bo_ref, g1_ref, be1_ref,
                          w1_ref, b1_ref, w2_ref, b2_ref, g2_ref, be2_ref,
                          o_ref, *, nhead, eps):
    x = x_ref[0].astype(jnp.float32)                     # (S, D)
    S, D = x.shape
    Dh = D // nhead
    scale = 1.0 / math.sqrt(Dh)

    q = jnp.dot(x, wq_ref[...], preferred_element_type=jnp.float32) + bq_ref[...]
    k = jnp.dot(x, wk_ref[...], preferred_element_type=jnp.float32) + bk_ref[...]
    v = jnp.dot(x, wv_ref[...], preferred_element_type=jnp.float32) + bv_ref[...]

    # Per-head attention, statically unrolled (nhead is small & static).  The
    # output projection is folded into the head loop:
    #   concat_h(o_h) @ Wo == sum_h o_h @ Wo[h*Dh:(h+1)*Dh, :]
    attn = jnp.zeros((S, D), jnp.float32)
    for h in range(nhead):
        sl = slice(h * Dh, (h + 1) * Dh)
        qh, kh, vh = q[:, sl], k[:, sl], v[:, sl]
        scores = jax.lax.dot_general(
            qh, kh, (((1,), (1,)), ((), ())),
            preferred_element_type=jnp.float32) * scale              # (S, S)
        scores = scores - jnp.max(scores, axis=-1, keepdims=True)
        p = jnp.exp(scores)
        p = p / jnp.sum(p, axis=-1, keepdims=True)
        oh = jnp.dot(p, vh, preferred_element_type=jnp.float32)      # (S, Dh)
        attn = attn + jnp.dot(oh, wo_ref[sl, :],
                              preferred_element_type=jnp.float32)
    attn = attn + bo_ref[...]

    # Post-norm residual blocks (norm_first=False), ReLU FFN (eval: no dropout)
    h1 = _ln(x + attn, g1_ref[...], be1_ref[...], eps)
    ff = jnp.dot(jnp.maximum(
            jnp.dot(h1, w1_ref[...], preferred_element_type=jnp.float32)
            + b1_ref[...], 0.0),
        w2_ref[...], preferred_element_type=jnp.float32) + b2_ref[...]
    out = _ln(h1 + ff, g2_ref[...], be2_ref[...], eps)
    o_ref[0] = out.astype(o_ref.dtype)


def encoder_layer_forward(x, lp, *, nhead, eps):
    B, S, D = x.shape
    F = lp['w1'].shape[1]
    kernel = functools.partial(_encoder_layer_kernel, nhead=nhead, eps=eps)

    def full(shape):
        return pl.BlockSpec(shape, lambda b, _n=len(shape): (0,) * _n)

    in_specs = [
        pl.BlockSpec((1, S, D), lambda b: (b, 0, 0)),    # x, one batch row
        full((D, D)), full((1, D)),                      # wq, bq
        full((D, D)), full((1, D)),                      # wk, bk
        full((D, D)), full((1, D)),                      # wv, bv
        full((D, D)), full((1, D)),                      # wo, bo
        full((1, D)), full((1, D)),                      # ln1 gamma/beta
        full((D, F)), full((1, F)),                      # ffn linear1
        full((F, D)), full((1, D)),                      # ffn linear2
        full((1, D)), full((1, D)),                      # ln2 gamma/beta
    ]
    return pl.pallas_call(
        kernel,
        grid=(B,),
        in_specs=in_specs,
        out_specs=pl.BlockSpec((1, S, D), lambda b: (b, 0, 0)),
        out_shape=jax.ShapeDtypeStruct((B, S, D), x.dtype),
        compiler_params=pltpu.CompilerParams(dimension_semantics=("parallel",)),
    )(x, lp['wq'], lp['bq'], lp['wk'], lp['bk'], lp['wv'], lp['bv'],
      lp['wo'], lp['bo'], lp['ln1_g'], lp['ln1_b'],
      lp['w1'], lp['b1'], lp['w2'], lp['b2'], lp['ln2_g'], lp['ln2_b'])


# ---------------------------------------------------------------------------
# Kernel 3: final encoder LayerNorm fused with the classifier Linear
# ---------------------------------------------------------------------------
def _head_kernel(x_ref, g_ref, b_ref, w_ref, bias_ref, o_ref, *, eps):
    x = x_ref[0].astype(jnp.float32)                     # (S, D)
    h = _ln(x, g_ref[...], b_ref[...], eps)
    o_ref[0] = (jnp.dot(h, w_ref[...], preferred_element_type=jnp.float32)
                + bias_ref[...]).astype(o_ref.dtype)


def head_forward(x, norm_g, norm_b, w_head, b_head, *, eps):
    B, S, D = x.shape
    P = w_head.shape[1]
    kernel = functools.partial(_head_kernel, eps=eps)
    in_specs = [
        pl.BlockSpec((1, S, D), lambda b: (b, 0, 0)),
        pl.BlockSpec((1, D), lambda b: (0, 0)),
        pl.BlockSpec((1, D), lambda b: (0, 0)),
        pl.BlockSpec((D, P), lambda b: (0, 0)),
        pl.BlockSpec((1, P), lambda b: (0, 0)),
    ]
    return pl.pallas_call(
        kernel,
        grid=(B,),
        in_specs=in_specs,
        out_specs=pl.BlockSpec((1, S, P), lambda b: (b, 0, 0)),
        out_shape=jax.ShapeDtypeStruct((B, S, P), x.dtype),
        compiler_params=pltpu.CompilerParams(dimension_semantics=("parallel",)),
    )(x, norm_g, norm_b, w_head, b_head)


# ---------------------------------------------------------------------------
# Full forward (Pallas) and pure-JAX reference
# ---------------------------------------------------------------------------
def transformer_forward(tokens, params, *, nhead, eps=1e-5):
    B, _ = tokens.shape
    x = embed_pos_forward(tokens, params['embedding'], params['pe'][:B, 0, :])
    for lp in params['layers']:
        x = encoder_layer_forward(x, lp, nhead=nhead, eps=eps)
    return head_forward(x, params['norm_g'], params['norm_b'],
                        params['w_head'], params['b_head'], eps=eps)


def transformer_reference(tokens, params, *, nhead, eps=1e-5):
    B, S = tokens.shape
    x = params['embedding'][tokens] + params['pe'][:B]   # pe[:batch] quirk
    for lp in params['layers']:
        D = x.shape[-1]
        Dh = D // nhead
        q = x @ lp['wq'] + lp['bq']
        k = x @ lp['wk'] + lp['bk']
        v = x @ lp['wv'] + lp['bv']

        def split(t):
            return t.reshape(B, S, nhead, Dh).transpose(0, 2, 1, 3)

        qh, kh, vh = split(q), split(k), split(v)
        scores = jnp.einsum('bhqd,bhkd->bhqk', qh, kh) / math.sqrt(Dh)
        p = jax.nn.softmax(scores, axis=-1)
        o = jnp.einsum('bhqk,bhkd->bhqd', p, vh)
        attn = o.transpose(0, 2, 1, 3).reshape(B, S, D) @ lp['wo'] + lp['bo']
        h1 = _ln(x + attn, lp['ln1_g'], lp['ln1_b'], eps)
        ff = jnp.maximum(h1 @ lp['w1'] + lp['b1'], 0.0) @ lp['w2'] + lp['b2']
        x = _ln(h1 + ff, lp['ln2_g'], lp['ln2_b'], eps)
    x = _ln(x, params['norm_g'], params['norm_b'], eps)
    return x @ params['w_head'] + params['b_head']


# ---------------------------------------------------------------------------
# Main
# ---------------------------------------------------------------------------
if __name__ == "__main__":
    # Small shapes consistent with the module (d_model % nhead == 0).
    VOCAB, POS_TAGS, MAX_LEN = 64, 8, 128
    B, S, D, H, FF, LAYERS = 2, 8, 32, 4, 64, 2

    key = jax.random.PRNGKey(0)
    k_param, k_tok = jax.random.split(key)
    params = init_params(k_param, vocab_size=VOCAB, pos_tag_size=POS_TAGS,
                         max_len=MAX_LEN, d_model=D, nhead=H,
                         num_layers=LAYERS, dim_ff=FF)
    tokens = jax.random.randint(k_tok, (B, S), 0, VOCAB, dtype=jnp.int32)

    out = jax.block_until_ready(transformer_forward(tokens, params, nhead=H))
    assert out.shape == (B, S, POS_TAGS), out.shape

    ref = jax.block_until_ready(transformer_reference(tokens, params, nhead=H))
    err = float(jnp.max(jnp.abs(out - ref)))
    assert err < 5e-4, f"kernel vs reference mismatch: max abs err = {err}"

    print("KERNEL_OK")
</pallas_src>

<mosaic_0001>
module attributes {stable_mosaic.version = 11 : i64} {
  func.func @_embed_pe_kernel(%arg0: i32, %arg1: memref<2x8xi32, #tpu.memory_space<smem>>, %arg2: memref<64x32xf32, #tpu.memory_space<vmem>>, %arg3: memref<2x32xf32, #tpu.memory_space<vmem>>, %arg4: memref<1x8x32xf32, #tpu.memory_space<vmem>>) attributes {dimension_semantics = [#tpu.dimension_semantics<parallel>], iteration_bounds = array<i64: 2>, scalar_prefetch = 1 : i64, scratch_operands = 0 : i64, tpu.core_type = #tpu.core_type<tc>, window_params = [{pipeline_mode = #tpu.pipeline_mode<synchronous>, transform_indices = @transform_0, window_bounds = array<i64: 64, 32>}, {pipeline_mode = #tpu.pipeline_mode<synchronous>, transform_indices = @transform_1, window_bounds = array<i64: 2, 32>}, {transform_indices = @transform_2, window_bounds = array<i64: 1, 8, 32>}]} {
    %0 = arith.index_cast %arg0 : i32 to index
    %c0 = arith.constant 0 : index
    %1 = vector.load %arg3[%0, %c0] : memref<2x32xf32, #tpu.memory_space<vmem>>, vector<1x32xf32>
    %2 = arith.index_cast %arg0 : i32 to index
    %c0_0 = arith.constant 0 : index
    %3 = memref.load %arg1[%2, %c0_0] : memref<2x8xi32, #tpu.memory_space<smem>>
    %4 = arith.index_cast %3 : i32 to index
    %c0_1 = arith.constant 0 : index
    %5 = vector.load %arg2[%4, %c0_1] : memref<64x32xf32, #tpu.memory_space<vmem>>, vector<1x32xf32>
    %6 = arith.addf %5, %1 : vector<1x32xf32>
    %c0_2 = arith.constant 0 : index
    %c0_3 = arith.constant 0 : index
    %c0_4 = arith.constant 0 : index
    %7 = vector.load %arg4[%c0_2, %c0_3, %c0_4] : memref<1x8x32xf32, #tpu.memory_space<vmem>>, vector<1x1x32xf32>
    %8 = vector.shape_cast %7 : vector<1x1x32xf32> to vector<1x32xf32>
    %9 = vector.shape_cast %6 : vector<1x32xf32> to vector<1x1x32xf32>
    tpu.vector_store %arg4[%c0_2, %c0_3, %c0_4], %9 {strides = array<i32>} : memref<1x8x32xf32, #tpu.memory_space<vmem>>, vector<1x1x32xf32>,
    %10 = arith.index_cast %arg0 : i32 to index
    %c1 = arith.constant 1 : index
    %11 = memref.load %arg1[%10, %c1] : memref<2x8xi32, #tpu.memory_space<smem>>
    %12 = arith.index_cast %11 : i32 to index
    %c0_5 = arith.constant 0 : index
    %13 = vector.load %arg2[%12, %c0_5] : memref<64x32xf32, #tpu.memory_space<vmem>>, vector<1x32xf32>
    %14 = arith.addf %13, %1 : vector<1x32xf32>
    %c0_6 = arith.constant 0 : index
    %c1_7 = arith.constant 1 : index
    %c0_8 = arith.constant 0 : index
    %15 = vector.load %arg4[%c0_6, %c1_7, %c0_8] : memref<1x8x32xf32, #tpu.memory_space<vmem>>, vector<1x1x32xf32>
    %16 = vector.shape_cast %15 : vector<1x1x32xf32> to vector<1x32xf32>
    %17 = vector.shape_cast %14 : vector<1x32xf32> to vector<1x1x32xf32>
    tpu.vector_store %arg4[%c0_6, %c1_7, %c0_8], %17 {strides = array<i32>} : memref<1x8x32xf32, #tpu.memory_space<vmem>>, vector<1x1x32xf32>,
    %18 = arith.index_cast %arg0 : i32 to index
    %c2 = arith.constant 2 : index
    %19 = memref.load %arg1[%18, %c2] : memref<2x8xi32, #tpu.memory_space<smem>>
    %20 = arith.index_cast %19 : i32 to index
    %c0_9 = arith.constant 0 : index
    %21 = vector.load %arg2[%20, %c0_9] : memref<64x32xf32, #tpu.memory_space<vmem>>, vector<1x32xf32>
    %22 = arith.addf %21, %1 : vector<1x32xf32>
    %c0_10 = arith.constant 0 : index
    %c2_11 = arith.constant 2 : index
    %c0_12 = arith.constant 0 : index
    %23 = vector.load %arg4[%c0_10, %c2_11, %c0_12] : memref<1x8x32xf32, #tpu.memory_space<vmem>>, vector<1x1x32xf32>
    %24 = vector.shape_cast %23 : vector<1x1x32xf32> to vector<1x32xf32>
    %25 = vector.shape_cast %22 : vector<1x32xf32> to vector<1x1x32xf32>
    tpu.vector_store %arg4[%c0_10, %c2_11, %c0_12], %25 {strides = array<i32>} : memref<1x8x32xf32, #tpu.memory_space<vmem>>, vector<1x1x32xf32>,
    %26 = arith.index_cast %arg0 : i32 to index
    %c3 = arith.constant 3 : index
    %27 = memref.load %arg1[%26, %c3] : memref<2x8xi32, #tpu.memory_space<smem>>
    %28 = arith.index_cast %27 : i32 to index
    %c0_13 = arith.constant 0 : index
    %29 = vector.load %arg2[%28, %c0_13] : memref<64x32xf32, #tpu.memory_space<vmem>>, vector<1x32xf32>
    %30 = arith.addf %29, %1 : vector<1x32xf32>
    %c0_14 = arith.constant 0 : index
    %c3_15 = arith.constant 3 : index
    %c0_16 = arith.constant 0 : index
    %31 = vector.load %arg4[%c0_14, %c3_15, %c0_16] : memref<1x8x32xf32, #tpu.memory_space<vmem>>, vector<1x1x32xf32>
    %32 = vector.shape_cast %31 : vector<1x1x32xf32> to vector<1x32xf32>
    %33 = vector.shape_cast %30 : vector<1x32xf32> to vector<1x1x32xf32>
    tpu.vector_store %arg4[%c0_14, %c3_15, %c0_16], %33 {strides = array<i32>} : memref<1x8x32xf32, #tpu.memory_space<vmem>>, vector<1x1x32xf32>,
    %34 = arith.index_cast %arg0 : i32 to index
    %c4 = arith.constant 4 : index
    %35 = memref.load %arg1[%34, %c4] : memref<2x8xi32, #tpu.memory_space<smem>>
    %36 = arith.index_cast %35 : i32 to index
    %c0_17 = arith.constant 0 : index
    %37 = vector.load %arg2[%36, %c0_17] : memref<64x32xf32, #tpu.memory_space<vmem>>, vector<1x32xf32>
    %38 = arith.addf %37, %1 : vector<1x32xf32>
    %c0_18 = arith.constant 0 : index
    %c4_19 = arith.constant 4 : index
    %c0_20 = arith.constant 0 : index
    %39 = vector.load %arg4[%c0_18, %c4_19, %c0_20] : memref<1x8x32xf32, #tpu.memory_space<vmem>>, vector<1x1x32xf32>
    %40 = vector.shape_cast %39 : vector<1x1x32xf32> to vector<1x32xf32>
    %41 = vector.shape_cast %38 : vector<1x32xf32> to vector<1x1x32xf32>
    tpu.vector_store %arg4[%c0_18, %c4_19, %c0_20], %41 {strides = array<i32>} : memref<1x8x32xf32, #tpu.memory_space<vmem>>, vector<1x1x32xf32>,
    %42 = arith.index_cast %arg0 : i32 to index
    %c5 = arith.constant 5 : index
    %43 = memref.load %arg1[%42, %c5] : memref<2x8xi32, #tpu.memory_space<smem>>
    %44 = arith.index_cast %43 : i32 to index
    %c0_21 = arith.constant 0 : index
    %45 = vector.load %arg2[%44, %c0_21] : memref<64x32xf32, #tpu.memory_space<vmem>>, vector<1x32xf32>
    %46 = arith.addf %45, %1 : vector<1x32xf32>
    %c0_22 = arith.constant 0 : index
    %c5_23 = arith.constant 5 : index
    %c0_24 = arith.constant 0 : index
    %47 = vector.load %arg4[%c0_22, %c5_23, %c0_24] : memref<1x8x32xf32, #tpu.memory_space<vmem>>, vector<1x1x32xf32>
    %48 = vector.shape_cast %47 : vector<1x1x32xf32> to vector<1x32xf32>
    %49 = vector.shape_cast %46 : vector<1x32xf32> to vector<1x1x32xf32>
    tpu.vector_store %arg4[%c0_22, %c5_23, %c0_24], %49 {strides = array<i32>} : memref<1x8x32xf32, #tpu.memory_space<vmem>>, vector<1x1x32xf32>,
    %50 = arith.index_cast %arg0 : i32 to index
    %c6 = arith.constant 6 : index
    %51 = memref.load %arg1[%50, %c6] : memref<2x8xi32, #tpu.memory_space<smem>>
    %52 = arith.index_cast %51 : i32 to index
    %c0_25 = arith.constant 0 : index
    %53 = vector.load %arg2[%52, %c0_25] : memref<64x32xf32, #tpu.memory_space<vmem>>, vector<1x32xf32>
    %54 = arith.addf %53, %1 : vector<1x32xf32>
    %c0_26 = arith.constant 0 : index
    %c6_27 = arith.constant 6 : index
    %c0_28 = arith.constant 0 : index
    %55 = vector.load %arg4[%c0_26, %c6_27, %c0_28] : memref<1x8x32xf32, #tpu.memory_space<vmem>>, vector<1x1x32xf32>
    %56 = vector.shape_cast %55 : vector<1x1x32xf32> to vector<1x32xf32>
    %57 = vector.shape_cast %54 : vector<1x32xf32> to vector<1x1x32xf32>
    tpu.vector_store %arg4[%c0_26, %c6_27, %c0_28], %57 {strides = array<i32>} : memref<1x8x32xf32, #tpu.memory_space<vmem>>, vector<1x1x32xf32>,
    %58 = arith.index_cast %arg0 : i32 to index
    %c7 = arith.constant 7 : index
    %59 = memref.load %arg1[%58, %c7] : memref<2x8xi32, #tpu.memory_space<smem>>
    %60 = arith.index_cast %59 : i32 to index
    %c0_29 = arith.constant 0 : index
    %61 = vector.load %arg2[%60, %c0_29] : memref<64x32xf32, #tpu.memory_space<vmem>>, vector<1x32xf32>
    %62 = arith.addf %61, %1 : vector<1x32xf32>
    %c0_30 = arith.constant 0 : index
    %c7_31 = arith.constant 7 : index
    %c0_32 = arith.constant 0 : index
    %63 = vector.load %arg4[%c0_30, %c7_31, %c0_32] : memref<1x8x32xf32, #tpu.memory_space<vmem>>, vector<1x1x32xf32>
    %64 = vector.shape_cast %63 : vector<1x1x32xf32> to vector<1x32xf32>
    %65 = vector.shape_cast %62 : vector<1x32xf32> to vector<1x1x32xf32>
    tpu.vector_store %arg4[%c0_30, %c7_31, %c0_32], %65 {strides = array<i32>} : memref<1x8x32xf32, #tpu.memory_space<vmem>>, vector<1x1x32xf32>,
    return
  }
  func.func @transform_0(%arg0: i32, %arg1: memref<2x8xi32, #tpu.memory_space<smem>>) -> (i32, i32) {
    %c0_i32 = arith.constant 0 : i32
    %c0_i32_0 = arith.constant 0 : i32
    %c0_i32_1 = arith.constant 0 : i32
    return %c0_i32, %c0_i32_0 : i32, i32
  }
  func.func @transform_1(%arg0: i32, %arg1: memref<2x8xi32, #tpu.memory_space<smem>>) -> (i32, i32) {
    %c0_i32 = arith.constant 0 : i32
    %c0_i32_0 = arith.constant 0 : i32
    %c0_i32_1 = arith.constant 0 : i32
    return %c0_i32, %c0_i32_0 : i32, i32
  }
  func.func @transform_2(%arg0: i32, %arg1: memref<2x8xi32, #tpu.memory_space<smem>>) -> (i32, i32, i32) {
    %c0_i32 = arith.constant 0 : i32
    %c0_i32_0 = arith.constant 0 : i32
    %c0_i32_1 = arith.constant 0 : i32
    return %arg0, %c0_i32, %c0_i32_0 : i32, i32, i32
  }
}

</mosaic_0001>

<bundles_post_ra>
// kernel: tpu_custom_call.1
= control target key start
LH: loop header
LB: loop body
LE: loop exit
PB: predicated region body
PF: predicated region fallthrough
CT: control target
= control target key end

     0   :  { %s381_s15 = smov [#allocation3]   ;;  %s537_s0 = inlined_call_operand.vmem [shape: s32[2,8], index: 0, kind: input, shape index: {}]   ;;  %s538_s1 = inlined_call_operand.vmem [shape: f32[64,32], index: 1, kind: input, shape index: {}]   ;;  %s539_s2 = inlined_call_operand.vmem [shape: f32[2,32], index: 2, kind: input, shape index: {}]   ;;  %s540_s3 = inlined_call_operand.hbm [shape: f32[2,8,32], index: 3, kind: output, shape index: {}]  }
   0x1   :  { %543 = sst [smem:[#allocation10_spill]] %s539_s2  ;;  %s9_s14 = sshll.u32 %s537_s0, 4  ;;  %s10_s14 = int_to_ptr.vmem [resolvable:$true] %s9_s14 }
   0x2   :  { %12 = dma.vmem_to_smem %s10_s14, 32, %s381_s15, [#allocation2] }
   0x3   :  { %359 = dma.done.wait [#allocation2], 32 }
   0x4   :  { %360 = vsyncadd [#allocation2], 4294967264 }
   0x5   :  { %15 = sfence }
   0x6   :  { %16 = vsyncpa [#allocation5], 0 }
   0x7   :  { %18 = vsyncpa [#allocation5 + $0x1], 0  ;;  %s405_s16 = smov 0   ;;  %s407_s17 = smov 0  }
   0x8   :  { %s409_s18 = smov 0   ;;  %s411_s19 = smov 0  }
   0x9 LB: > { %544 = sst [smem:[#allocation8_spill]] %s375_s18  ;;  %s426_s0 = sadd.s32 4294967295, %s379_s19   ;;  %s379_s19 = sphi %s411_s19, %s554_s19   ;;  %s375_s18 = sphi %s409_s18, %s551_s18   ;;  %s371_s17 = sphi %s407_s17, %s553_s17   ;;  %s367_s16 = sphi %s405_s16, %s552_s16  }
   0xa   : > { %s254_s20 = sadd.s32 4294967294, %s379_s19   ;;  %s430_s21 = sadd.s32 1, %s379_s19  }
   0xb   : > { %s73_s22 = sadd.s32 1, %s375_s18  ;;  %s70_s23 = ssub.s32 %s379_s19, %s430_s21 }
   0xc   : > { %p83_p0 = scmp.ne.s32.totalorder %s375_s18, %s371_s17  ;;  %p71_p1 = scmp.eq.s32.totalorder %s70_s23, 0 }
   0xd   : > { %p84_p2 = scmp.eq.s32.totalorder %s426_s0, 1  ;;  %p89_p3 = scmp.ne.s32.totalorder %s371_s17, %s367_s16 }
   0xe   : > { %p90_p4 = scmp.eq.s32.totalorder %s254_s20, 1  ;;  %p256_p7 = scmp.ge.s32.totalorder %s379_s19, 1 }
   0xf   : > { %s441_s24 = scalar_select %p71_p1, %s375_s18, %s73_s22  }
  0x10   : > { %p443_p5 = por %p84_p2, %p83_p0  ;;  %p447_p6 = por %p90_p4, %p89_p3 }
  0x11   : > { %545 = sst [smem:[#allocation9_spill]] %s441_s24  ;;  %p114_p8 = scmp.lt.s32.totalorder %s379_s19, 3 }
  0x13   : > { %p115_p9 = pnand %p256_p7, %p114_p8 }
  0x14   : > { %s541_s27 = sand.u32 (!%p115_p9), 1, %s371_s17   ;;  %s258_s29 = sshll.u32 (!%p115_p9), %s426_s0, 7 }
  0x15   : > { %118 = sbr.rel (%p115_p9) target bundleno = 50 (0x32), region = 28  ;;  %s257_s28 = sshll.u32 (!%p115_p9), %s541_s27, 3 }
  0x16   : > { %s548_s2 = sld [smem:[#allocation10_spill]] (!%p115_p9)  ;;  %s140_s7 = sadd.s32 (!%p115_p9), 1, %s258_s29 }
  0x17   : > { %s134_s6 = sld [smem:[#allocation3 + %s258_s29]] (!%p115_p9)  ;;  %s146_s9 = sadd.s32 (!%p115_p9), 2, %s258_s29 }
  0x18   : > { %s141_s8 = sld [smem:[#allocation3 + %s140_s7]] (!%p115_p9)  ;;  %s152_s11 = sadd.s32 (!%p115_p9), 3, %s258_s29 }
  0x19   : > { %s147_s10 = sld [smem:[#allocation3 + %s146_s9]] (!%p115_p9)  ;;  %s158_s13 = sadd.s32 (!%p115_p9), 4, %s258_s29 }
  0x1a   : > { %s153_s12 = sld [smem:[#allocation3 + %s152_s11]]  ;;  %s164_s15 = sadd.s32 5, %s258_s29  ;;  %vm138_vm0 = vcmask 253952  }
  0x1b   : > { %s159_s14 = sld [smem:[#allocation3 + %s158_s13]]  ;;  %s170_s30 = sadd.s32 6, %s258_s29 }
  0x1c   : > { %s131_s5 = scalar_lea.vmem %s548_s2, %s426_s0  ;;  %s165_s27 = sld [smem:[#allocation3 + %s164_s15]] }
  0x1d   : > { %v132_v0 = vld [vmem:[%s131_s5] sm:$0x1]  ;;  %s135_s23 = scalar_lea.vmem %s538_s1, %s134_s6  ;;  %s176_s4 = sadd.s32 7, %s258_s29 }
  0x1e   : > { %v136_v1 = vld [vmem:[%s135_s23] sm:$0x1]  ;;  %s142_s9 = scalar_lea.vmem %s538_s1, %s141_s8  ;;  %s171_s11 = sld [smem:[#allocation3 + %s170_s30]] }
  0x1f   : > { %v137_v2 = vadd.f32 %v136_v1, %v132_v0  ;;  %v143_v3 = vld [vmem:[%s142_s9] sm:$0x1]  ;;  %s148_s24 = scalar_lea.vmem %s538_s1, %s147_s10  ;;  %s177_s18 = sld [smem:[#allocation3 + %s176_s4]] }
  0x20   : > { %s470_s20 = scalar_lea.vmem [#allocation4], %s257_s28  ;;  %v144_v4 = vadd.f32 %v143_v3, %v132_v0  ;;  %v149_v5 = vld [vmem:[%s148_s24] sm:$0x1]  ;;  %s154_s6 = scalar_lea.vmem %s538_s1, %s153_s12 }
  0x21   : > { %139 = vst.msk [vmem:[%s470_s20] sm:$0x1] %vm138_vm0, %v137_v2  ;;  %s260_s8 = sshll.u32 %s426_s0, 3  ;;  %v150_v6 = vadd.f32 %v149_v5, %v132_v0  ;;  %v155_v7 = vld [vmem:[%s154_s6] sm:$0x1]  ;;  %s160_s15 = scalar_lea.vmem %s538_s1, %s159_s14 }
  0x22   : > { %s193_s30 = scalar_lea.hbm %s540_s3, %s260_s8  ;;  %145 = vst.msk [vmem:[%s470_s20 + $0x1] sm:$0x1] %vm138_vm0, %v144_v4  ;;  %v156_v8 = vadd.f32 %v155_v7, %v132_v0  ;;  %v161_v9 = vld [vmem:[%s160_s15] sm:$0x1]  ;;  %s166_s0 = scalar_lea.vmem %s538_s1, %s165_s27 }
  0x23   : > { %151 = vst.msk [vmem:[%s470_s20 + $0x2] sm:$0x1] %vm138_vm0, %v150_v6  ;;  %v162_v10 = vadd.f32 %v161_v9, %v132_v0  ;;  %v167_v11 = vld [vmem:[%s166_s0] sm:$0x1]  ;;  %s195_s12 = sshll.u32 %s470_s20, 4  ;;  %s197_s5 = sshll.u32 %s193_s30, 4  ;;  %s196_s12 = int_to_ptr.vmem [resolvable:$true] %s195_s12  ;;  %s198_s5 = int_to_ptr.hbm [resolvable:$true] %s197_s5 }
  0x24   : > { %157 = vst.msk [vmem:[%s470_s20 + $0x3] sm:$0x1] %vm138_vm0, %v156_v8  ;;  %v168_v12 = vadd.f32 %v167_v11, %v132_v0  ;;  %s172_s9 = scalar_lea.vmem %s538_s1, %s171_s11  ;;  %s549_s11 = sand.u32 1, %s371_s17  }
  0x25   : > { %163 = vst.msk [vmem:[%s470_s20 + $0x4] sm:$0x1] %vm138_vm0, %v162_v10  ;;  %v173_v13 = vld [vmem:[%s172_s9] sm:$0x1]  ;;  %s178_s2 = scalar_lea.vmem %s538_s1, %s177_s18  ;;  %s183_s29 = scalar_lea.sflag [#allocation5], %s549_s11 }
  0x26   : > { %169 = vst.msk [vmem:[%s470_s20 + $0x5] sm:$0x1] %vm138_vm0, %v168_v12  ;;  %v174_v14 = vadd.f32 %v173_v13, %v132_v0  ;;  %v179_v15 = vld [vmem:[%s178_s2] sm:$0x1]  ;;  %s329_s6 = sshra.s32 %s198_s5, 4  ;;  %s335_s28 = scalar_lea.hbm %s540_s3, 16  ;;  %s330_s6 = int_to_ptr.hbm [resolvable:$true] %s329_s6 }
  0x27   : > { %v180_v16 = vadd.f32 %v179_v15, %v132_v0  ;;  %s331_s8 = scalar_lea.hbm %s330_s6, 8  ;;  %p336_p13 = scmp.lt.s32.totalorder %s330_s6, %s540_s3 }
  0x28   : > { %175 = vst.msk [vmem:[%s470_s20 + $0x6] sm:$0x1] %vm138_vm0, %v174_v14  ;;  %p332_p10 = scmp.ne.s32.totalorder %s330_s6, %s331_s8  ;;  %p337_p0 = scmp.lt.s32.totalorder %s335_s28, %s331_s8 }
  0x29   : > { %181 = vst.msk [vmem:[%s470_s20 + $0x7] sm:$0x1] %vm138_vm0, %v180_v16 }
  0x2a   : > { %p333_p11 = pnand %p332_p10, %p443_p5  ;;  %p338_p1 = por %p337_p0, %p336_p13 }
  0x2c   : > { %p334_p12 = pneg %p333_p11 }
  0x2e   : > { %p339_p2 = pnand %p338_p1, %p334_p12 }
  0x30   : > { %342 = shalt.err (!%p339_p2)
}
  0x31   : > { %263 = dma.vmem_to_hbm [thread:$0]  (%p443_p5), %s196_s12, 128, %s198_s5, %s183_s29  }
  0x32 PF: > { %p269_p3 = scmp.ge.s32.totalorder %s379_s19, 2  ;;  %s209_s20 = sand.u32 1, %s367_s16  }
  0x33   : > { %s210_s23 = scalar_lea.sflag [#allocation5], %s209_s20 }
  0x34   : > { %p266_p4 = pnand %p269_p3, %p447_p6 }
  0x36   : > { %p267_p7 = pneg %p266_p4 }
  0x38   : > { %362 = dma.done.wait (%p267_p7), %s210_s23, 128  }
  0x39   : > { %364 = vsyncadd (%p267_p7), %s210_s23, 4294967168  ;;  %s550_s30 = sld [smem:[#allocation8_spill]]  ;;  %p21_p8 = scmp.ge.s32.totalorder %s430_s21, 4  }
  0x3a   : > { %s551_s18 = sld [smem:[#allocation9_spill]]  ;;  %s552_s16 = smov %s371_s17 }
  0x3b   : > { %s554_s19 = smov %s430_s21  ;;  %23 = sbr.rel (!%p21_p8) target bundleno = 9 (0x9), region = 69 }
  0x3f   : > { %s553_s17 = smov %s550_s30 }
  0x40   :  { %216 = vsyncpa [#allocation5], 1 }
  0x41   :  { %218 = vsyncpa [#allocation5 + $0x1], 1 }

</bundles_post_ra>
